<compile_context>
chip_gen: v5e
topology: v5e:2x2
jax: 0.10.0
libtpu: 0.0.40
codegen_flags: <defaults>
</compile_context>

<pallas_src>
import functools

import jax
import jax.numpy as jnp
from jax import lax
from jax.experimental import pallas as pl
from jax.experimental.pallas import tpu as pltpu

_LANES = 128


def _round_up(x, m):
    return ((x + m - 1) // m) * m


def _gate_kernel(x_ref, w_ref, o_ref, *, n_expert, compute_dtype):
    # x_ref: (TB, D) native dtype | w_ref: (D, Ep) compute dtype | o_ref: (TB, Ep) out dtype
    x = x_ref[...].astype(compute_dtype)  # in-register cast, no HBM round-trip for x
    logits = jnp.dot(x, w_ref[...], preferred_element_type=jnp.float32)  # (TB, Ep) f32 acc
    # Mask the lane-padding columns (>= n_expert) out of the softmax.
    col = lax.broadcasted_iota(jnp.int32, logits.shape, dimension=1)
    logits = jnp.where(col < n_expert, logits, -jnp.inf)
    # Numerically-stable softmax over the last dim, all in f32.
    m = jnp.max(logits, axis=-1, keepdims=True)
    e = jnp.exp(logits - m)
    denom = jnp.sum(e, axis=-1, keepdims=True)
    # Exact f32 normalization (rows sum to 1); cost is hidden under the HBM-bound DMA.
    o_ref[...] = (e / denom).astype(o_ref.dtype)


def prepare_gate_weight(weight, compute_dtype=jnp.bfloat16):
    """One-time prep of the nn.Linear weight [n_expert, d_input]:
    transpose -> [d_input, n_expert], cast to compute dtype, zero-pad the expert dim up to
    a multiple of 128 lanes (lane-dense matmul and output stores).
    Do this at parameter-load time, NOT per forward call."""
    n_expert, d_input = weight.shape
    e_pad = _round_up(max(n_expert, _LANES), _LANES)
    w = weight.T.astype(compute_dtype)  # (D, E)
    if e_pad != n_expert:
        w = jnp.pad(w, ((0, 0), (0, e_pad - n_expert)))  # zero cols, masked in-kernel
    return w


def gate_forward(x, w_prepared, n_expert, *, block_rows=512,
                 vmem_budget_bytes=48 * 1024 * 1024):
    """softmax(x @ W.T, axis=-1) where W is the original [n_expert, d_input] linear weight
    (already processed by prepare_gate_weight).  x: [B, D].  Returns [B, n_expert] in x.dtype."""
    B, D = x.shape
    Dw, Ep = w_prepared.shape
    assert D == Dw, "w_prepared must come from prepare_gate_weight(weight[E, D])"
    out_dtype = x.dtype

    # ---- batch-tile selection -------------------------------------------------------
    # Resident VMEM: 2 x-buffers (native dtype) + 2 weight buffers + 2 out buffers.
    w_bytes = 2 * D * Ep * w_prepared.dtype.itemsize
    per_row = 2 * D * x.dtype.itemsize + 2 * Ep * jnp.dtype(out_dtype).itemsize
    tb_vmem_cap = max(8, ((vmem_budget_bytes - w_bytes) // per_row) // 8 * 8)

    if B <= 8:
        tb = B  # tiny batch: single block equal to the full dim (satisfies the (8,128) rule)
    else:
        # >= 2 grid steps so v7x can shard the batch across both TensorCores; cap by VMEM.
        tb = max(8, min(block_rows, _round_up(pl.cdiv(B, 2), 8), tb_vmem_cap))
    grid = (pl.cdiv(B, tb),)  # ragged final block handled by Pallas (no jnp.pad of x)

    vmem_needed = w_bytes + tb * per_row
    vmem_limit = int(min(vmem_needed + (8 << 20), 64 << 20))  # stay under v7x physical VMEM

    cost = pl.CostEstimate(
        flops=2 * B * D * n_expert,
        transcendentals=B * n_expert,
        bytes_accessed=(x.size * x.dtype.itemsize
                        + w_prepared.size * w_prepared.dtype.itemsize
                        + B * Ep * jnp.dtype(out_dtype).itemsize),
    )

    kernel = functools.partial(_gate_kernel, n_expert=n_expert,
                               compute_dtype=w_prepared.dtype)

    out = pl.pallas_call(
        kernel,
        out_shape=jax.ShapeDtypeStruct((B, Ep), out_dtype),
        grid_spec=pltpu.PrefetchScalarGridSpec(
            num_scalar_prefetch=0,
            grid=grid,
            in_specs=[
                # x: streamed / double-buffered over the batch axis, in its native dtype.
                pl.BlockSpec((tb, D), lambda i: (i, 0)),
                # weight: constant block index -> fetched once, stays resident in VMEM.
                pl.BlockSpec((D, Ep), lambda i: (0, 0)),
            ],
            out_specs=pl.BlockSpec((tb, Ep), lambda i: (i, 0)),
        ),
        compiler_params=pltpu.CompilerParams(
            # Independent batch tiles -> megacore / dual-TC sharding where available.
            dimension_semantics=("parallel",),
            vmem_limit_bytes=vmem_limit,
        ),
        cost_estimate=cost,
    )(x, w_prepared)

    return out[:, :n_expert]


if __name__ == "__main__":
    # Small, module-consistent shapes: batch=8, d_input=32, n_expert=4
    B, D, E = 8, 32, 4

    key = jax.random.PRNGKey(0)
    kx, kw = jax.random.split(key)
    x = jax.random.normal(kx, (B, D), dtype=jnp.float32)
    # Deterministic init standing in for init_linear (synthetic weights, no checkpoint).
    weight = jax.random.normal(kw, (E, D), dtype=jnp.float32) * (1.0 / jnp.sqrt(D))

    # Weight prep is done once (parameter-load time), not per call.
    w_prep = prepare_gate_weight(weight)

    out = jax.block_until_ready(gate_forward(x, w_prep, E))

    # References: bf16-operand / f32-accumulate (matches kernel math) and pure-f32 (module).
    xb = x.astype(jnp.bfloat16).astype(jnp.float32)
    wb = weight.astype(jnp.bfloat16).astype(jnp.float32)
    ref_bf16 = jax.nn.softmax(xb @ wb.T, axis=-1)
    ref_f32 = jax.nn.softmax(x @ weight.T, axis=-1)

    assert out.shape == (B, E)
    assert jnp.allclose(out, ref_bf16, atol=5e-3, rtol=5e-3)
    assert jnp.allclose(out, ref_f32, atol=3e-2, rtol=3e-2)
    # Exact normalization (plain f32 divide) -> rows sum to 1 to f32 precision.
    assert jnp.allclose(jnp.sum(out, axis=-1), jnp.ones((B,)), atol=1e-5)

    print("KERNEL_OK")
</pallas_src>

<mosaic_0001>
module attributes {stable_mosaic.version = 11 : i64} {
  func.func @_gate_kernel(%arg0: i32, %arg1: memref<8x32xf32, #tpu.memory_space<vmem>>, %arg2: memref<32x128xbf16, #tpu.memory_space<vmem>>, %arg3: memref<8x128xf32, #tpu.memory_space<vmem>>) attributes {dimension_semantics = [#tpu.dimension_semantics<parallel>], iteration_bounds = array<i64: 1>, scalar_prefetch = 0 : i64, scratch_operands = 0 : i64, tpu.core_type = #tpu.core_type<tc>, window_params = [{transform_indices = @transform_0, window_bounds = array<i64: 8, 32>}, {pipeline_mode = #tpu.pipeline_mode<synchronous>, transform_indices = @transform_1, window_bounds = array<i64: 32, 128>}, {transform_indices = @transform_2, window_bounds = array<i64: 8, 128>}]} {
    %c0 = arith.constant 0 : index
    %c0_0 = arith.constant 0 : index
    %0 = vector.load %arg1[%c0, %c0_0] : memref<8x32xf32, #tpu.memory_space<vmem>>, vector<8x32xf32>
    %1 = arith.truncf %0 : vector<8x32xf32> to vector<8x32xbf16>
    %c0_1 = arith.constant 0 : index
    %c0_2 = arith.constant 0 : index
    %2 = vector.load %arg2[%c0_1, %c0_2] : memref<32x128xbf16, #tpu.memory_space<vmem>>, vector<32x128xbf16>
    %cst = arith.constant dense<0.000000e+00> : vector<8x128xf32>
    %3 = tpu.matmul %1, %2, %cst {dimension_numbers = #tpu.dot_dimension_numbers<[1], [0], [0], [1], [0, 0, 1, 1], [], []>} : vector<8x32xbf16>, vector<32x128xbf16>, vector<8x128xf32> -> vector<8x128xf32>
    %4 = tpu.iota {dimensions = array<i32: 1>} : vector<8x128xi32>
    %c4_i32 = arith.constant 4 : i32
    %5 = vector.broadcast %c4_i32 : i32 to vector<8x128xi32>
    %6 = arith.cmpi slt, %4, %5 : vector<8x128xi32>
    %cst_3 = arith.constant 0xFF800000 : f32
    %7 = vector.broadcast %cst_3 : f32 to vector<8x128xf32>
    %8 = arith.select %6, %3, %7 : vector<8x128xi1>, vector<8x128xf32>
    %cst_4 = arith.constant dense<0xFF800000> : vector<8xf32>
    %9 = vector.multi_reduction <maximumf>, %8, %cst_4 [1] : vector<8x128xf32> to vector<8xf32>
    %10 = vector.shape_cast %9 : vector<8xf32> to vector<8x1xf32>
    %11 = vector.broadcast %10 : vector<8x1xf32> to vector<8x128xf32>
    %12 = arith.subf %8, %11 : vector<8x128xf32>
    %13 = math.exp %12 : vector<8x128xf32>
    %cst_5 = arith.constant dense<0.000000e+00> : vector<8xf32>
    %14 = vector.multi_reduction <add>, %13, %cst_5 [1] : vector<8x128xf32> to vector<8xf32>
    %15 = vector.shape_cast %14 : vector<8xf32> to vector<8x1xf32>
    %16 = vector.broadcast %15 : vector<8x1xf32> to vector<8x128xf32>
    %17 = arith.divf %13, %16 : vector<8x128xf32>
    %c0_6 = arith.constant 0 : index
    %c0_7 = arith.constant 0 : index
    %18 = vector.load %arg3[%c0_6, %c0_7] : memref<8x128xf32, #tpu.memory_space<vmem>>, vector<8x128xf32>
    tpu.vector_store %arg3[%c0_6, %c0_7], %17 {strides = array<i32>} : memref<8x128xf32, #tpu.memory_space<vmem>>, vector<8x128xf32>,
    return
  }
  func.func @transform_0(%arg0: i32) -> (i32, i32) {
    %c0_i32 = arith.constant 0 : i32
    %c0_i32_0 = arith.constant 0 : i32
    return %arg0, %c0_i32 : i32, i32
  }
  func.func @transform_1(%arg0: i32) -> (i32, i32) {
    %c0_i32 = arith.constant 0 : i32
    %c0_i32_0 = arith.constant 0 : i32
    %c0_i32_1 = arith.constant 0 : i32
    return %c0_i32, %c0_i32_0 : i32, i32
  }
  func.func @transform_2(%arg0: i32) -> (i32, i32) {
    %c0_i32 = arith.constant 0 : i32
    %c0_i32_0 = arith.constant 0 : i32
    return %arg0, %c0_i32 : i32, i32
  }
}

</mosaic_0001>

<bundles_post_ra>
// kernel: tpu_custom_call.1
= control target key start
LH: loop header
LB: loop body
LE: loop exit
PB: predicated region body
PF: predicated region fallthrough
CT: control target
= control target key end

     0   :  { %7 = vsyncpa [#allocation3], 0  ;;  %s250_s0 = inlined_call_operand.hbm [shape: f32[8,32], index: 0, kind: input, shape index: {}]   ;;  %s251_s1 = inlined_call_operand.hbm [shape: bf16[32,128], index: 1, kind: input, shape index: {}]   ;;  %s252_s2 = inlined_call_operand.hbm [shape: f32[8,128], index: 2, kind: output, shape index: {}]  }
   0x1   :  { %8 = vsyncpa [#allocation6], 0 }
   0x2   :  { %9 = vsyncpa [#allocation4], 0  ;;  %s15_s11 = sshll.u32 %s250_s0, 4  ;;  %s221_s12 = smov [#allocation2]   ;;  %s16_s11 = int_to_ptr.hbm [resolvable:$true] %s15_s11 }
   0x3   :  { %s17_s13 = sshll.u32 %s221_s12, 4  ;;  %s25_s16 = sshll.u32 %s251_s1, 4  ;;  %s18_s13 = int_to_ptr.vmem [resolvable:$true] %s17_s13  ;;  %s26_s16 = int_to_ptr.hbm [resolvable:$true] %s25_s16 }
   0x4   :  { %20 = dma.hbm_to_vmem [thread:$0]  %s16_s11, 128, %s18_s13, [#allocation3]  }
   0x5   :  { %s222_s17 = smov [#allocation5]   ;;  %s223_s19 = smov 64  }
   0x6   :  { %s27_s18 = sshll.u32 %s222_s17, 4  ;;  %s224_s20 = smov 4   ;;  %s28_s18 = int_to_ptr.vmem [resolvable:$true] %s27_s18 }
   0x7   :  { %33 = dma.hbm_to_vmem [thread:$0]  %s26_s16, 256, %s28_s18, [#allocation6], %s223_s19, %s223_s19, %s224_s20  }
   0x8   :  { %215 = dma.done.wait [#allocation3], 128  }
   0x9   :  { %216 = vsyncadd [#allocation3], 4294967168 }
   0xa   :  { %217 = dma.done.wait [#allocation6], 256  }
   0xb   :  { %218 = vsyncadd [#allocation6], 4294967040  ;;  %v133_v0 = vld [vmem:[#allocation5 + $0x8] sm:$0xff]  ;;  %v132_v1 = vld [vmem:[#allocation5] sm:$0xff]  ;;  %vm61_vm0 = vcmask 261120   ;;  %v78_v4 = vlaneseq  ;;  %s225_s0 = smov [#allocation7]  }
   0xc   :  { %71 = vmatpush.bf16.msra.mxu0 %v133_v0  ;;  %v43_v2 = vld [vmem:[#allocation2] sm:$0xff]  ;;  %s110_s1 = sshll.u32 %s225_s0, 4  ;;  %s112_s23 = sshll.u32 %s252_s2, 4  ;;  %s111_s1 = int_to_ptr.vmem [resolvable:$true] %s110_s1  ;;  %s113_s23 = int_to_ptr.hbm [resolvable:$true] %s112_s23 }
   0xd   :  { %v44_v3 = vpack.c.bf16 %v43_v2, %v43_v2  ;;  %v79_v5 = vand.u32 127, %v78_v4 }
   0xf   :  { %vm80_vm1 = vcmp.lt.s32.totalorder %v79_v5, 4 }
  0x10   :  { %72 = vmatpush.bf16.msra.mxu0 %v132_v1 }
  0x13   :  { %131 = vmatmul.msk.bf16.vlgmr.msra.gmra.mxu0 %vm61_vm0, %v44_v3 }
  0x90   :  { %v74_v6 = vpop.f32.mrf.mxu0 }
  0x91   :  { %v81_v7 = vsel %vm80_vm1, %v74_v6, -inf }
  0x92   :  { %82 = vmax.xlane.f32.xlu0 %v81_v7 }
  0x98   :  { %v76_v8 = vpop.f32.mrf.mxu0 }
 0x105   :  { %v83_v9 = vpop.xlane.xlu0 %82 }
 0x106   :  { %v84_v10 = vsub.f32 %v81_v7, %v83_v9 }
 0x108   :  { %v85_v11 = vmul.f32 1.442695, %v84_v10 }
 0x10a   :  { %139 = vpow2.f32 %v85_v11 }
 0x110   :  { %v140_v12 = vpop.eup %139 }
 0x111   :  { %87 = vadd.xlane.f32.xlu0 %v140_v12 }
 0x184   :  { %v88_v13 = vpop.xlane.xlu0 %87 }
 0x185   :  { %141 = vrcp.f32 %v88_v13  ;;  %v100_v17 = vand.u32 2147483648, %v88_v13  ;;  %v98_v19 = vand.u32 2147483647, %v88_v13  ;;  %vm94_vm3 = vweird.f32 %v88_v13 }
 0x187   :  { %v101_v21 = vor.u32 1.1754944e-38, %v100_v17  ;;  %vm99_vm5 = vcmp.eq.f32.partialorder %v98_v19, 8.507059e+37 }
 0x18b   :  { %v142_v14 = vpop.eup %141 }
 0x18c   :  { %v90_v15 = vmul.f32 %v142_v14, %v88_v13  ;;  %vm95_vm2 = vweird.f32 %v142_v14 }
 0x18d   :  { %vm96_vm4 = vmor %vm94_vm3, %vm95_vm2 }
 0x18e   :  { %v91_v16 = vsub.f32 1.0, %v90_v15 }
 0x190   :  { %v92_v18 = vmul.f32 %v142_v14, %v91_v16 }
 0x192   :  { %v93_v20 = vadd.f32 %v142_v14, %v92_v18 }
 0x194   :  { %v97_v22 = vsel %vm96_vm4, %v142_v14, %v93_v20 }
 0x195   :  { %v102_v23 = vsel %vm99_vm5, %v101_v21, %v97_v22 }
 0x196   :  { %v103_v24 = vmul.f32 %v140_v12, %v102_v23 }
 0x198   :  { %104 = vst [vmem:[#allocation7] sm:$0xff] %v103_v24 }
 0x199   :  { %115 = dma.vmem_to_hbm [thread:$0]  %s111_s1, 128, %s113_s23, [#allocation4]  }
 0x19a   :  { %219 = dma.done.wait [#allocation4], 128  }
 0x19b   :  { %220 = vsyncadd [#allocation4], 4294967168 }
 0x19c   :  { %120 = vsyncpa [#allocation3], 1 }
 0x19d   :  { %121 = vsyncpa [#allocation6], 1 }
 0x19e   :  { %122 = vsyncpa [#allocation4], 1 }

</bundles_post_ra>
